<compile_context>
chip_gen: v6e
topology: v6e:2x2x1
jax: 0.10.0
libtpu: 0.0.40
codegen_flags: <defaults>
</compile_context>

<pallas_src>
import math

import jax
import jax.numpy as jnp
from jax.experimental import pallas as pl
from jax.experimental.pallas import tpu as pltpu

_LANE = 128
_SUBLANE = 8


def make_positional_encoding(d_model: int, max_len: int = 6, dtype=jnp.float32):
    """Build the pe buffer, shape (1, max_len, d_model) (matches the PyTorch buffer)."""
    assert d_model % 2 == 0, "PositionalEncoding requires even d_model"
    position = jnp.arange(max_len, dtype=jnp.float32)[:, None]               # (max_len, 1)
    div_term = jnp.exp(
        jnp.arange(0, d_model, 2, dtype=jnp.float32) * (-math.log(10000.0) / d_model)
    )                                                                         # (d_model//2,)
    angles = position * div_term                                              # (max_len, d_model//2)
    pe = jnp.zeros((max_len, d_model), dtype=jnp.float32)
    pe = pe.at[:, 0::2].set(jnp.sin(angles))
    pe = pe.at[:, 1::2].set(jnp.cos(angles))
    return pe[None, :, :].astype(dtype)                                       # (1, max_len, d_model)


def _add_pe_kernel(x_ref, pe_ref, o_ref):
    # x_ref:  (tile_b, tile_f) row/lane tile of the flattened input
    # pe_ref: (1, tile_f)      shared positional-encoding slice (broadcast over rows)
    o_ref[...] = x_ref[...] + pe_ref[...]


def positional_encoding_forward(
    x,
    pe,
    *,
    tile_bytes: int = 4 * 1024 * 1024,     # per x/out tile; 2x(in+out)+pe ~= 17 MiB pipelined
    min_pallas_bytes: int = 256 * 1024,    # below this, plain XLA add is strictly faster
    force_pallas: bool = False,
    donate_x: bool = False,
):
    """x: (B, S, D), pe: (1, max_len, D) with S <= max_len. Returns x + pe[:, :S, :]."""
    B, S, D = x.shape
    max_len = pe.shape[1]
    if S > max_len:
        raise ValueError(f"sequence length {S} exceeds max_len {max_len}")

    pe_s = pe[:, :S, :].astype(x.dtype)

    itemsize = jnp.dtype(x.dtype).itemsize
    total_bytes = B * S * D * itemsize

    # Tiny inputs: pallas_call + DMA setup cost dwarfs the add; let XLA fuse it.
    if total_bytes < min_pallas_bytes and not force_pallas:
        return x + pe_s

    F = S * D
    x2 = x.reshape(B, F)
    pe2 = pe_s.reshape(1, F)

    # --- Lane (F) tiling -----------------------------------------------------
    # Budget the lane tile so that at least min(B, 8) rows fit in tile_bytes,
    # keeping the row tile a legal multiple of 8 without blowing the VMEM budget.
    lane_budget = max(_LANE * itemsize, tile_bytes // min(B, _SUBLANE))

    pad_f = 0
    Fp = F
    if F * itemsize > lane_budget:
        # Must tile along F: lane tiles have to be multiples of 128, so pad F if needed.
        pad_f = (-F) % _LANE
        Fp = F + pad_f
        if pad_f:
            x2 = jnp.pad(x2, ((0, 0), (0, pad_f)))
            pe2 = jnp.pad(pe2, ((0, 0), (0, pad_f)))
        lanes_per_tile = max(1, lane_budget // (_LANE * itemsize))
        tile_f = min(Fp // _LANE, lanes_per_tile) * _LANE
    else:
        tile_f = Fp  # full-extent lane block: always legal, even if F % 128 != 0
    grid_f = pl.cdiv(Fp, tile_f)

    # --- Row (B) tiling ------------------------------------------------------
    rows_fit = max(1, tile_bytes // (tile_f * itemsize))
    if B <= rows_fit:
        tile_b = B
    else:
        tile_b = max(_SUBLANE, (rows_fit // _SUBLANE) * _SUBLANE)
    grid_b = pl.cdiv(B, tile_b)

    # v7x megacore: for non-tiny inputs keep >= 2 parallel blocks so both
    # TensorCores (and their DMA engines) participate.  Neutral on v5e/v6e.
    if grid_b * grid_f == 1 and total_bytes > min_pallas_bytes and B >= 2 * _SUBLANE:
        tile_b = max(_SUBLANE, (pl.cdiv(B, 2) // _SUBLANE) * _SUBLANE)
        grid_b = pl.cdiv(B, tile_b)

    # Explicit scoped-VMEM budget: 2-deep pipeline buffers for x, out and pe.
    vmem_needed = 2 * (2 * tile_b * tile_f + tile_f) * itemsize
    vmem_limit = max(32 * 1024 * 1024, (vmem_needed * 3) // 2)

    out2 = pl.pallas_call(
        _add_pe_kernel,
        out_shape=jax.ShapeDtypeStruct((B, Fp), x.dtype),
        grid_spec=pltpu.PrefetchScalarGridSpec(
            num_scalar_prefetch=0,
            # F is the outer (slow) axis so the pe block stays resident across
            # the inner row loop.
            grid=(grid_f, grid_b),
            in_specs=[
                pl.BlockSpec((tile_b, tile_f), lambda j, i: (i, j)),  # x tile
                pl.BlockSpec((1, tile_f), lambda j, i: (0, j)),       # pe slice
            ],
            out_specs=pl.BlockSpec((tile_b, tile_f), lambda j, i: (i, j)),
        ),
        compiler_params=pltpu.CompilerParams(
            dimension_semantics=("parallel", "parallel"),
            vmem_limit_bytes=int(vmem_limit),
        ),
        input_output_aliases=({0: 0} if donate_x else {}),
    )(x2, pe2)

    if pad_f:
        out2 = out2[:, :F]
    return out2.reshape(B, S, D)


if __name__ == "__main__":
    # Small shapes consistent with the module: d_model=32, max_len=6, seq=4, batch=2
    d_model = 32
    max_len = 6
    batch = 2
    seq = 4

    key = jax.random.PRNGKey(0)
    x = jax.random.normal(key, (batch, seq, d_model), dtype=jnp.float32)
    pe = make_positional_encoding(d_model, max_len=max_len, dtype=jnp.float32)

    # Force the Pallas path so the kernel itself is exercised at this tiny shape.
    out = positional_encoding_forward(x, pe, force_pallas=True)
    out = jax.block_until_ready(out)

    # Reference check in plain JAX (same semantics as the PyTorch forward).
    ref = x + pe[:, :seq, :]
    assert out.shape == x.shape
    assert jnp.allclose(out, ref, atol=1e-6), "mismatch vs reference"

    # Also exercise the tiny-input XLA fast path for completeness.
    out_fast = jax.block_until_ready(positional_encoding_forward(x, pe))
    assert jnp.allclose(out_fast, ref, atol=1e-6), "fast-path mismatch vs reference"

    print("KERNEL_OK")
</pallas_src>

<mosaic_0001>
module attributes {stable_mosaic.version = 11 : i64} {
  func.func @_add_pe_kernel(%arg0: i32, %arg1: i32, %arg2: memref<2x128xf32, #tpu.memory_space<vmem>>, %arg3: memref<1x128xf32, #tpu.memory_space<vmem>>, %arg4: memref<2x128xf32, #tpu.memory_space<vmem>>) attributes {dimension_semantics = [#tpu.dimension_semantics<parallel>, #tpu.dimension_semantics<parallel>], iteration_bounds = array<i64: 1, 1>, scalar_prefetch = 0 : i64, scratch_operands = 0 : i64, tpu.core_type = #tpu.core_type<tc>, window_params = [{transform_indices = @transform_0, window_bounds = array<i64: 2, 128>}, {transform_indices = @transform_1, window_bounds = array<i64: 1, 128>}, {transform_indices = @transform_2, window_bounds = array<i64: 2, 128>}]} {
    %c0 = arith.constant 0 : index
    %c0_0 = arith.constant 0 : index
    %0 = vector.load %arg2[%c0, %c0_0] : memref<2x128xf32, #tpu.memory_space<vmem>>, vector<2x128xf32>
    %c0_1 = arith.constant 0 : index
    %c0_2 = arith.constant 0 : index
    %1 = vector.load %arg3[%c0_1, %c0_2] : memref<1x128xf32, #tpu.memory_space<vmem>>, vector<1x128xf32>
    %2 = vector.broadcast %1 : vector<1x128xf32> to vector<2x128xf32>
    %3 = arith.addf %0, %2 : vector<2x128xf32>
    %c0_3 = arith.constant 0 : index
    %c0_4 = arith.constant 0 : index
    %4 = vector.load %arg4[%c0_3, %c0_4] : memref<2x128xf32, #tpu.memory_space<vmem>>, vector<2x128xf32>
    tpu.vector_store %arg4[%c0_3, %c0_4], %3 {strides = array<i32>} : memref<2x128xf32, #tpu.memory_space<vmem>>, vector<2x128xf32>,
    return
  }
  func.func @transform_0(%arg0: i32, %arg1: i32) -> (i32, i32) {
    %c0_i32 = arith.constant 0 : i32
    return %arg1, %arg0 : i32, i32
  }
  func.func @transform_1(%arg0: i32, %arg1: i32) -> (i32, i32) {
    %c0_i32 = arith.constant 0 : i32
    %c0_i32_0 = arith.constant 0 : i32
    return %c0_i32, %arg0 : i32, i32
  }
  func.func @transform_2(%arg0: i32, %arg1: i32) -> (i32, i32) {
    %c0_i32 = arith.constant 0 : i32
    return %arg1, %arg0 : i32, i32
  }
}

</mosaic_0001>

<bundles_post_ra>
// kernel: tpu_custom_call.1
= control target key start
LH: loop header
LB: loop body
LE: loop exit
PB: predicated region body
PF: predicated region fallthrough
CT: control target
= control target key end

     0   :  { %7 = vsyncpa [#allocation3], 0  ;;  %s122_s0 = inlined_call_operand.hbm [shape: f32[2,128], index: 0, kind: input, shape index: {}]   ;;  %s123_s1 = inlined_call_operand.vmem [shape: f32[1,128], index: 1, kind: input, shape index: {}]   ;;  %s124_s2 = inlined_call_operand.hbm [shape: f32[2,128], index: 2, kind: output, shape index: {}]  }
   0x1   :  { %8 = vsyncpa [#allocation4], 0  ;;  %s96_s9 = smov [#allocation2]  }
   0x2   :  { %s15_s10 = sshll.u32 %s96_s9, 4  ;;  %s16_s10 = int_to_ptr.vmem [resolvable:$true] %s15_s10 }
   0x3   :  { %s60_s11 = scalar_lea.vmem %s16_s10, 32  ;;  %p65_p1 = scmp.lt.s32.totalorder %s16_s10, %s16_s10 }
   0x4   :  { %p61_p0 = scmp.ne.s32.totalorder %s16_s10, %s60_s11  ;;  %p66_p2 = scmp.lt.s32.totalorder %s60_s11, %s60_s11 }
   0x6   :  { %p67_p3 = por %p66_p2, %p65_p1 }
   0x8   :  { %p68_p4 = pnand %p67_p3, %p61_p0 }
   0xa   :  { %71 = shalt.err (!%p68_p4)
}
   0xb   :  { %18 = dma.hbm_to_vmem [thread:$0]  %s122_s0, 32, %s16_s10, [#allocation3]  }
   0xc   :  { %92 = dma.done.wait [#allocation3], 32  }
   0xd   :  { %93 = vsyncadd [#allocation3], 4294967264  ;;  %s97_s14 = smov [#allocation5]   ;;  %v24_v0 = vld [vmem:[#allocation2] sm:$0x3] }
   0xe   :  { %s40_s15 = sshll.u32 %s97_s14, 4  ;;  %v49_v1 = vld [vmem:[%s123_s1] ss:$0 sm:$0xff]  ;;  %s41_s15 = int_to_ptr.vmem [resolvable:$true] %s40_s15 }
   0xf   :  { %v32_v2 = vadd.f32 %v49_v1, %v24_v0  ;;  %s72_s18 = scalar_lea.vmem %s41_s15, 32  ;;  %p77_p6 = scmp.lt.s32.totalorder %s41_s15, %s41_s15 }
  0x10   :  { %p73_p5 = scmp.ne.s32.totalorder %s41_s15, %s72_s18  ;;  %p78_p7 = scmp.lt.s32.totalorder %s72_s18, %s72_s18 }
  0x11   :  { %33 = vst [vmem:[#allocation5] sm:$0x3] %v32_v2 }
  0x12   :  { %p79_p8 = por %p78_p7, %p77_p6 }
  0x14   :  { %p80_p9 = pnand %p79_p8, %p73_p5 }
  0x16   :  { %83 = shalt.err (!%p80_p9)
}
  0x17   :  { %43 = dma.vmem_to_hbm [thread:$0]  %s41_s15, 32, %s124_s2, [#allocation4]  }
  0x18   :  { %94 = dma.done.wait [#allocation4], 32  }
  0x19   :  { %95 = vsyncadd [#allocation4], 4294967264 }
  0x1a   :  { %47 = vsyncpa [#allocation3], 1 }
  0x1b   :  { %48 = vsyncpa [#allocation4], 1 }

</bundles_post_ra>
